<compile_context>
chip_gen: v5e
topology: v5e:2x2
jax: 0.10.0
libtpu: 0.0.40
codegen_flags: <defaults>
</compile_context>

<pallas_src>
import numpy as np
import jax
import jax.numpy as jnp
from jax.experimental import pallas as pl
from jax.experimental.pallas import tpu as pltpu

# model hyper-parameters (match the PyTorch module)
B, S = 2, 8          # batch / sequence length (small example)
D = 32               # d_model
H = 4                # num_heads
HD = D // H          # head dim = 8
L = 4                # num encoder layers
FF = 128             # dim_feedforward (hidden_size)
OUT = 1              # output_size
EPS = 1e-5           # nn.LayerNorm default eps
SCALE = 1.0 / np.sqrt(HD)
BS = B * S


def transformer_kernel(src_ref, emb_w_ref, pe_b_ref, hmask_ref,
                       inw_ref, inb_ref, ow_ref, ob_ref,
                       ln1g_ref, ln1b_ref, ln2g_ref, ln2b_ref,
                       f1w_ref, f1b_ref, f2w_ref, f2b_ref,
                       decw_ref, decb_ref, out_ref):
    def layernorm(x, g, b):
        mu = jnp.mean(x, axis=-1, keepdims=True)
        xc = x - mu
        var = jnp.mean(xc * xc, axis=-1, keepdims=True)
        return xc * jax.lax.rsqrt(var + EPS) * g + b

    # embedding Linear(1, D) as a broadcast outer product; [bias + positional
    # encoding] pre-folded into one additive term (dropout = identity in eval).
    x0 = src_ref[...] * emb_w_ref[...] + pe_b_ref[...]            # (BS, D)

    def layer(l, x):
        # this layer's parameters (weights pre-transposed, Q scale pre-folded)
        inw = inw_ref[l]                                          # (D, 3D)
        inb = inb_ref[l]                                          # (1, 3D)
        ow = ow_ref[l]                                            # (D, D)
        ob = ob_ref[l]                                            # (1, D)
        ln1g = ln1g_ref[l]; ln1b = ln1b_ref[l]                    # (1, D)
        ln2g = ln2g_ref[l]; ln2b = ln2b_ref[l]                    # (1, D)
        f1w = f1w_ref[l]; f1b = f1b_ref[l]                        # (D, FF), (1, FF)
        f2w = f2w_ref[l]; f2b = f2b_ref[l]                        # (FF, D), (1, D)

        # ---- fused multi-head self attention ----
        # single QKV projection for all rows
        qkv = jnp.dot(x, inw, preferred_element_type=jnp.float32) + inb  # (BS, 3D)
        q2 = qkv[:, 0:D]                                          # (BS, D)
        v2 = qkv[:, 2 * D:3 * D]                                  # (BS, D)
        k3 = qkv[:, D:2 * D].reshape(B, S, D)                     # (B, S, D)

        # Per-head scores/context via column masks on full-width tensors:
        # masked columns contribute exact zeros, so there is no per-head lane
        # slicing, no concat, no head<->batch relayout.  ctx_h is nonzero only
        # in head h's output columns, so merging heads is a plain add.
        attn = jnp.zeros((BS, D), jnp.float32)
        for h in range(H):
            m = hmask_ref[h:h + 1, :]                             # (1, D)
            qh = (q2 * m).reshape(B, S, D)
            vh = (v2 * m).reshape(B, S, D)
            s = jnp.einsum('bqd,bkd->bqk', qh, k3,
                           preferred_element_type=jnp.float32)    # (B, S, S)
            s = s - jnp.max(s, axis=-1, keepdims=True)
            p = jnp.exp(s)
            p = p / jnp.sum(p, axis=-1, keepdims=True)
            ctx = jnp.einsum('bqk,bkd->bqd', p, vh,
                             preferred_element_type=jnp.float32)  # (B, S, D)
            attn = attn + ctx.reshape(BS, D)
        attn = jnp.dot(attn, ow, preferred_element_type=jnp.float32) + ob

        # post-norm encoder layer (PyTorch default norm_first=False)
        x = layernorm(x + attn, ln1g, ln1b)

        # ---- feed-forward (relu) ----
        h1 = jnp.dot(x, f1w, preferred_element_type=jnp.float32) + f1b
        h1 = jnp.maximum(h1, 0.0)
        h2 = jnp.dot(h1, f2w, preferred_element_type=jnp.float32) + f2b
        return layernorm(x + h2, ln2g, ln2b)

    x = jax.lax.fori_loop(0, L, layer, x0)

    # mean over sequence dim (torch: output.mean(dim=0) on (S, B, D))
    pooled = jnp.mean(x.reshape(B, S, D), axis=1)                 # (B, D)
    # decoder Linear(D, 1) on the VPU: multiply + lane reduce (no MXU drain)
    out_ref[...] = (jnp.sum(pooled * decw_ref[...], axis=-1, keepdims=True)
                    + decb_ref[...])                              # (B, OUT)


def make_positional_encoding(seq_len, d_model):
    pos = np.arange(seq_len, dtype=np.float32)[:, None]
    div = np.exp(np.arange(0, d_model, 2, dtype=np.float32) *
                 (-np.log(10000.0) / d_model))
    pe = np.zeros((seq_len, d_model), dtype=np.float32)
    pe[:, 0::2] = np.sin(pos * div)
    pe[:, 1::2] = np.cos(pos * div)
    return jnp.asarray(pe)


def init_params(key):
    # parameters in PyTorch layout (Linear weights are (out, in))
    ks = jax.random.split(key, 10)
    u = lambda k, shape, s=0.1: jax.random.uniform(k, shape, jnp.float32, -s, s)
    return dict(
        emb_w=u(ks[0], (D, 1)),
        emb_b=jnp.zeros((1, D), jnp.float32),
        in_proj_w=u(ks[1], (L, 3 * D, D)),
        in_proj_b=u(ks[2], (L, 1, 3 * D), 0.02),
        out_proj_w=u(ks[3], (L, D, D)),
        out_proj_b=u(ks[4], (L, 1, D), 0.02),
        ln1_g=jnp.ones((L, 1, D), jnp.float32),
        ln1_b=jnp.zeros((L, 1, D), jnp.float32),
        ln2_g=jnp.ones((L, 1, D), jnp.float32),
        ln2_b=jnp.zeros((L, 1, D), jnp.float32),
        ff1_w=u(ks[5], (L, FF, D)),
        ff1_b=u(ks[6], (L, 1, FF), 0.02),
        ff2_w=u(ks[7], (L, D, FF)),
        ff2_b=u(ks[8], (L, 1, D), 0.02),
        dec_w=u(ks[9], (OUT, D)),
        dec_b=jnp.zeros((1, OUT), jnp.float32),
    )


def preprocess_params(params, batch, seq):
    """One-time host-side layout plumbing (NOT per forward call):
    pre-transpose all Linear weights, pre-tile the positional encoding and
    fold in the embedding bias, fold 1/sqrt(head_dim) into the Q columns of
    in_proj, reshape the decoder, and build the per-head column masks."""
    pe = make_positional_encoding(seq, D)                          # (S, D)
    pe_b = jnp.tile(pe, (batch, 1)) + params["emb_b"]              # (BS, D)
    emb_w = params["emb_w"].reshape(1, D)                          # (1, D)
    scale_cols = jnp.concatenate(
        [jnp.full((D,), SCALE, jnp.float32), jnp.ones((2 * D,), jnp.float32)])
    in_w = jnp.transpose(params["in_proj_w"], (0, 2, 1)) * scale_cols  # (L, D, 3D)
    in_b = params["in_proj_b"] * scale_cols                           # (L, 1, 3D)
    out_w = jnp.transpose(params["out_proj_w"], (0, 2, 1))            # (L, D, D)
    f1_w = jnp.transpose(params["ff1_w"], (0, 2, 1))                  # (L, D, FF)
    f2_w = jnp.transpose(params["ff2_w"], (0, 2, 1))                  # (L, FF, D)
    dec_w = params["dec_w"].reshape(1, D)                             # (1, D)
    dec_b = params["dec_b"].reshape(1, OUT)                           # (1, 1)
    hmask = (jnp.arange(D)[None, :] // HD
             == jnp.arange(H)[:, None]).astype(jnp.float32)           # (H, D)
    return (emb_w, pe_b, hmask,
            in_w, in_b, out_w, params["out_proj_b"],
            params["ln1_g"], params["ln1_b"], params["ln2_g"], params["ln2_b"],
            f1_w, params["ff1_b"], f2_w, params["ff2_b"],
            dec_w, dec_b)


@jax.jit
def time_series_transformer(src, prep):
    bsz, ssz, _ = src.shape
    src_flat = src.reshape(bsz * ssz, 1)                          # (BS, 1)
    args = (src_flat, *prep)
    # ~250 KB resident -> grid-less, fully VMEM-resident single invocation
    # (fits all generations; no tiling / pipelining needed at this shape).
    return pl.pallas_call(
        transformer_kernel,
        out_shape=jax.ShapeDtypeStruct((bsz, OUT), jnp.float32),
        in_specs=[pl.BlockSpec(memory_space=pltpu.MemorySpace.VMEM)] * len(args),
        out_specs=pl.BlockSpec(memory_space=pltpu.MemorySpace.VMEM),
    )(*args)


def reference_forward(src, params):
    """Pure-JAX reference mirroring the PyTorch module (eval mode)."""
    hp = jax.lax.Precision.HIGHEST
    bsz, ssz, _ = src.shape
    pe = make_positional_encoding(ssz, D)

    def layernorm(x, g, b):
        mu = jnp.mean(x, axis=-1, keepdims=True)
        xc = x - mu
        var = jnp.mean(xc * xc, axis=-1, keepdims=True)
        return xc * jax.lax.rsqrt(var + EPS) * g + b

    x = src.reshape(-1, 1) @ params["emb_w"].T + params["emb_b"]      # (BS, D)
    x = (x.reshape(bsz, ssz, D) + pe[None]).reshape(-1, D)
    for l in range(L):
        qkv = jnp.dot(x, params["in_proj_w"][l].T, precision=hp) + params["in_proj_b"][l]
        q = (qkv[:, 0:D] * SCALE).reshape(bsz, ssz, H, HD).transpose(0, 2, 1, 3)
        k = qkv[:, D:2 * D].reshape(bsz, ssz, H, HD).transpose(0, 2, 1, 3)
        v = qkv[:, 2 * D:3 * D].reshape(bsz, ssz, H, HD).transpose(0, 2, 1, 3)
        s = jnp.einsum('bhqd,bhkd->bhqk', q, k, precision=hp)
        p = jax.nn.softmax(s, axis=-1)
        ctx = jnp.einsum('bhqk,bhkd->bhqd', p, v, precision=hp)
        ctx = ctx.transpose(0, 2, 1, 3).reshape(-1, D)
        attn = jnp.dot(ctx, params["out_proj_w"][l].T, precision=hp) + params["out_proj_b"][l]
        x = layernorm(x + attn, params["ln1_g"][l], params["ln1_b"][l])
        h1 = jnp.maximum(jnp.dot(x, params["ff1_w"][l].T, precision=hp) + params["ff1_b"][l], 0.0)
        h2 = jnp.dot(h1, params["ff2_w"][l].T, precision=hp) + params["ff2_b"][l]
        x = layernorm(x + h2, params["ln2_g"][l], params["ln2_b"][l])
    pooled = jnp.mean(x.reshape(bsz, ssz, D), axis=1)
    return jnp.dot(pooled, params["dec_w"].T, precision=hp) + params["dec_b"]


if __name__ == "__main__":
    key = jax.random.PRNGKey(0)
    k_param, k_in = jax.random.split(key)
    params = init_params(k_param)
    prep = preprocess_params(params, B, S)        # one-time preprocessing
    # src: (batch, seq, input_size=1)
    src = jax.random.normal(k_in, (B, S, 1), dtype=jnp.float32)

    out = jax.block_until_ready(time_series_transformer(src, prep))
    assert out.shape == (B, OUT), out.shape
    assert jnp.all(jnp.isfinite(out))

    ref = jax.block_until_ready(reference_forward(src, params))
    assert jnp.allclose(out, ref, atol=2e-3, rtol=2e-3), (out, ref)
    # TODO(synk): dropout layers are treated as identity (eval mode); training-mode
    # dropout RNG is not reproduced.
    print("KERNEL_OK")
</pallas_src>

<mosaic_0001>
module attributes {stable_mosaic.version = 11 : i64} {
  func.func @transformer_kernel(%arg0: memref<16x1xf32, #tpu.memory_space<vmem>>, %arg1: memref<1x32xf32, #tpu.memory_space<vmem>>, %arg2: memref<16x32xf32, #tpu.memory_space<vmem>>, %arg3: memref<4x32xf32, #tpu.memory_space<vmem>>, %arg4: memref<4x32x96xf32, #tpu.memory_space<vmem>>, %arg5: memref<4x1x96xf32, #tpu.memory_space<vmem>>, %arg6: memref<4x32x32xf32, #tpu.memory_space<vmem>>, %arg7: memref<4x1x32xf32, #tpu.memory_space<vmem>>, %arg8: memref<4x1x32xf32, #tpu.memory_space<vmem>>, %arg9: memref<4x1x32xf32, #tpu.memory_space<vmem>>, %arg10: memref<4x1x32xf32, #tpu.memory_space<vmem>>, %arg11: memref<4x1x32xf32, #tpu.memory_space<vmem>>, %arg12: memref<4x32x128xf32, #tpu.memory_space<vmem>>, %arg13: memref<4x1x128xf32, #tpu.memory_space<vmem>>, %arg14: memref<4x128x32xf32, #tpu.memory_space<vmem>>, %arg15: memref<4x1x32xf32, #tpu.memory_space<vmem>>, %arg16: memref<1x32xf32, #tpu.memory_space<vmem>>, %arg17: memref<1x1xf32, #tpu.memory_space<vmem>>, %arg18: memref<2x1xf32, #tpu.memory_space<vmem>>) attributes {dimension_semantics = [], scalar_prefetch = 0 : i64, scratch_operands = 0 : i64, tpu.core_type = #tpu.core_type<tc>} {
    %c0 = arith.constant 0 : index
    %c0_0 = arith.constant 0 : index
    %0 = vector.load %arg0[%c0, %c0_0] : memref<16x1xf32, #tpu.memory_space<vmem>>, vector<16x1xf32>
    %c0_1 = arith.constant 0 : index
    %c0_2 = arith.constant 0 : index
    %1 = vector.load %arg1[%c0_1, %c0_2] : memref<1x32xf32, #tpu.memory_space<vmem>>, vector<1x32xf32>
    %2 = vector.broadcast %0 : vector<16x1xf32> to vector<16x32xf32>
    %3 = vector.broadcast %1 : vector<1x32xf32> to vector<16x32xf32>
    %4 = arith.mulf %2, %3 : vector<16x32xf32>
    %c0_3 = arith.constant 0 : index
    %c0_4 = arith.constant 0 : index
    %5 = vector.load %arg2[%c0_3, %c0_4] : memref<16x32xf32, #tpu.memory_space<vmem>>, vector<16x32xf32>
    %6 = arith.addf %4, %5 : vector<16x32xf32>
    %c0_i32 = arith.constant 0 : i32
    %c4_i32 = arith.constant 4 : i32
    %7 = arith.addi %c0_i32, %c4_i32 : i32
    %c1_i32 = arith.constant 1 : i32
    %8 = scf.for %arg19 = %c0_i32 to %7 step %c1_i32 iter_args(%arg20 = %6) -> (vector<16x32xf32>)  : i32 {
      %22 = arith.index_cast %arg19 : i32 to index
      %c0_14 = arith.constant 0 : index
      %c0_15 = arith.constant 0 : index
      %23 = vector.load %arg4[%22, %c0_14, %c0_15] : memref<4x32x96xf32, #tpu.memory_space<vmem>>, vector<1x32x96xf32>
      %24 = vector.shape_cast %23 : vector<1x32x96xf32> to vector<32x96xf32>
      %25 = arith.index_cast %arg19 : i32 to index
      %c0_16 = arith.constant 0 : index
      %c0_17 = arith.constant 0 : index
      %26 = vector.load %arg5[%25, %c0_16, %c0_17] : memref<4x1x96xf32, #tpu.memory_space<vmem>>, vector<1x1x96xf32>
      %27 = vector.shape_cast %26 : vector<1x1x96xf32> to vector<1x96xf32>
      %28 = arith.index_cast %arg19 : i32 to index
      %c0_18 = arith.constant 0 : index
      %c0_19 = arith.constant 0 : index
      %29 = vector.load %arg6[%28, %c0_18, %c0_19] : memref<4x32x32xf32, #tpu.memory_space<vmem>>, vector<1x32x32xf32>
      %30 = vector.shape_cast %29 : vector<1x32x32xf32> to vector<32x32xf32>
      %31 = arith.index_cast %arg19 : i32 to index
      %c0_20 = arith.constant 0 : index
      %c0_21 = arith.constant 0 : index
      %32 = vector.load %arg7[%31, %c0_20, %c0_21] : memref<4x1x32xf32, #tpu.memory_space<vmem>>, vector<1x1x32xf32>
      %33 = vector.shape_cast %32 : vector<1x1x32xf32> to vector<1x32xf32>
      %34 = arith.index_cast %arg19 : i32 to index
      %c0_22 = arith.constant 0 : index
      %c0_23 = arith.constant 0 : index
      %35 = vector.load %arg8[%34, %c0_22, %c0_23] : memref<4x1x32xf32, #tpu.memory_space<vmem>>, vector<1x1x32xf32>
      %36 = vector.shape_cast %35 : vector<1x1x32xf32> to vector<1x32xf32>
      %37 = arith.index_cast %arg19 : i32 to index
      %c0_24 = arith.constant 0 : index
      %c0_25 = arith.constant 0 : index
      %38 = vector.load %arg9[%37, %c0_24, %c0_25] : memref<4x1x32xf32, #tpu.memory_space<vmem>>, vector<1x1x32xf32>
      %39 = vector.shape_cast %38 : vector<1x1x32xf32> to vector<1x32xf32>
      %40 = arith.index_cast %arg19 : i32 to index
      %c0_26 = arith.constant 0 : index
      %c0_27 = arith.constant 0 : index
      %41 = vector.load %arg10[%40, %c0_26, %c0_27] : memref<4x1x32xf32, #tpu.memory_space<vmem>>, vector<1x1x32xf32>
      %42 = vector.shape_cast %41 : vector<1x1x32xf32> to vector<1x32xf32>
      %43 = arith.index_cast %arg19 : i32 to index
      %c0_28 = arith.constant 0 : index
      %c0_29 = arith.constant 0 : index
      %44 = vector.load %arg11[%43, %c0_28, %c0_29] : memref<4x1x32xf32, #tpu.memory_space<vmem>>, vector<1x1x32xf32>
      %45 = vector.shape_cast %44 : vector<1x1x32xf32> to vector<1x32xf32>
      %46 = arith.index_cast %arg19 : i32 to index
      %c0_30 = arith.constant 0 : index
      %c0_31 = arith.constant 0 : index
      %47 = vector.load %arg12[%46, %c0_30, %c0_31] : memref<4x32x128xf32, #tpu.memory_space<vmem>>, vector<1x32x128xf32>
      %48 = vector.shape_cast %47 : vector<1x32x128xf32> to vector<32x128xf32>
      %49 = arith.index_cast %arg19 : i32 to index
      %c0_32 = arith.constant 0 : index
      %c0_33 = arith.constant 0 : index
      %50 = vector.load %arg13[%49, %c0_32, %c0_33] : memref<4x1x128xf32, #tpu.memory_space<vmem>>, vector<1x1x128xf32>
      %51 = vector.shape_cast %50 : vector<1x1x128xf32> to vector<1x128xf32>
      %52 = arith.index_cast %arg19 : i32 to index
      %c0_34 = arith.constant 0 : index
      %c0_35 = arith.constant 0 : index
      %53 = vector.load %arg14[%52, %c0_34, %c0_35] : memref<4x128x32xf32, #tpu.memory_space<vmem>>, vector<1x128x32xf32>
      %54 = vector.shape_cast %53 : vector<1x128x32xf32> to vector<128x32xf32>
      %55 = arith.index_cast %arg19 : i32 to index
      %c0_36 = arith.constant 0 : index
      %c0_37 = arith.constant 0 : index
      %56 = vector.load %arg15[%55, %c0_36, %c0_37] : memref<4x1x32xf32, #tpu.memory_space<vmem>>, vector<1x1x32xf32>
      %57 = vector.shape_cast %56 : vector<1x1x32xf32> to vector<1x32xf32>
      %cst_38 = arith.constant dense<0.000000e+00> : vector<16x96xf32>
      %58 = tpu.matmul %arg20, %24, %cst_38 {dimension_numbers = #tpu.dot_dimension_numbers<[1], [0], [0], [1], [0, 0, 1, 1], [], []>} : vector<16x32xf32>, vector<32x96xf32>, vector<16x96xf32> -> vector<16x96xf32>
      %59 = vector.broadcast %27 : vector<1x96xf32> to vector<16x96xf32>
      %60 = arith.addf %58, %59 : vector<16x96xf32>
      %61 = vector.extract_strided_slice %60 {offsets = [0, 0], sizes = [16, 32], strides = [1, 1]} : vector<16x96xf32> to vector<16x32xf32>
      %62 = vector.extract_strided_slice %60 {offsets = [0, 64], sizes = [16, 32], strides = [1, 1]} : vector<16x96xf32> to vector<16x32xf32>
      %63 = vector.extract_strided_slice %60 {offsets = [0, 32], sizes = [16, 32], strides = [1, 1]} : vector<16x96xf32> to vector<16x32xf32>
      %64 = vector.shape_cast %63 : vector<16x32xf32> to vector<2x8x32xf32>
      %cst_39 = arith.constant 0.000000e+00 : f32
      %65 = vector.broadcast %cst_39 : f32 to vector<16x32xf32>
      %c0_40 = arith.constant 0 : index
      %c0_41 = arith.constant 0 : index
      %66 = vector.load %arg3[%c0_40, %c0_41] : memref<4x32xf32, #tpu.memory_space<vmem>>, vector<1x32xf32>
      %67 = vector.broadcast %66 : vector<1x32xf32> to vector<16x32xf32>
      %68 = arith.mulf %61, %67 : vector<16x32xf32>
      %69 = vector.shape_cast %68 : vector<16x32xf32> to vector<2x8x32xf32>
      %70 = vector.broadcast %66 : vector<1x32xf32> to vector<16x32xf32>
      %71 = arith.mulf %62, %70 : vector<16x32xf32>
      %72 = vector.shape_cast %71 : vector<16x32xf32> to vector<2x8x32xf32>
      "tpu.trace_start"() <{level = 10 : i32, message = "bqd,bkd->bqk"}> : () -> ()
      %cst_42 = arith.constant dense<0.000000e+00> : vector<2x8x8xf32>
      %73 = tpu.matmul %69, %64, %cst_42 {dimension_numbers = #tpu.dot_dimension_numbers<[2], [2], [1], [1], [0, 0, 0, 1, 1, 1], [0], [0]>} : vector<2x8x32xf32>, vector<2x8x32xf32>, vector<2x8x8xf32> -> vector<2x8x8xf32>
      "tpu.trace_stop"() : () -> ()
      %cst_43 = arith.constant dense<0xFF800000> : vector<2x8xf32>
      %74 = vector.multi_reduction <maximumf>, %73, %cst_43 [2] : vector<2x8x8xf32> to vector<2x8xf32>
      %75 = vector.shape_cast %74 : vector<2x8xf32> to vector<2x8x1xf32>
      %76 = vector.broadcast %75 : vector<2x8x1xf32> to vector<2x8x8xf32>
      %77 = arith.subf %73, %76 : vector<2x8x8xf32>
      %78 = math.exp %77 : vector<2x8x8xf32>
      %cst_44 = arith.constant dense<0.000000e+00> : vector<2x8xf32>
      %79 = vector.multi_reduction <add>, %78, %cst_44 [2] : vector<2x8x8xf32> to vector<2x8xf32>
      %80 = vector.shape_cast %79 : vector<2x8xf32> to vector<2x8x1xf32>
      %81 = vector.broadcast %80 : vector<2x8x1xf32> to vector<2x8x8xf32>
      %82 = arith.divf %78, %81 : vector<2x8x8xf32>
      "tpu.trace_start"() <{level = 10 : i32, message = "bqk,bkd->bqd"}> : () -> ()
      %cst_45 = arith.constant dense<0.000000e+00> : vector<2x8x32xf32>
      %83 = tpu.matmul %82, %72, %cst_45 {dimension_numbers = #tpu.dot_dimension_numbers<[2], [1], [1], [2], [0, 0, 0, 1, 1, 2], [0], [0]>} : vector<2x8x8xf32>, vector<2x8x32xf32>, vector<2x8x32xf32> -> vector<2x8x32xf32>
      "tpu.trace_stop"() : () -> ()
      %84 = vector.shape_cast %83 : vector<2x8x32xf32> to vector<16x32xf32>
      %85 = arith.addf %65, %84 : vector<16x32xf32>
      %c1 = arith.constant 1 : index
      %c0_46 = arith.constant 0 : index
      %86 = vector.load %arg3[%c1, %c0_46] : memref<4x32xf32, #tpu.memory_space<vmem>>, vector<1x32xf32>
      %87 = vector.broadcast %86 : vector<1x32xf32> to vector<16x32xf32>
      %88 = arith.mulf %61, %87 : vector<16x32xf32>
      %89 = vector.shape_cast %88 : vector<16x32xf32> to vector<2x8x32xf32>
      %90 = vector.broadcast %86 : vector<1x32xf32> to vector<16x32xf32>
      %91 = arith.mulf %62, %90 : vector<16x32xf32>
      %92 = vector.shape_cast %91 : vector<16x32xf32> to vector<2x8x32xf32>
      "tpu.trace_start"() <{level = 10 : i32, message = "bqd,bkd->bqk"}> : () -> ()
      %cst_47 = arith.constant dense<0.000000e+00> : vector<2x8x8xf32>
      %93 = tpu.matmul %89, %64, %cst_47 {dimension_numbers = #tpu.dot_dimension_numbers<[2], [2], [1], [1], [0, 0, 0, 1, 1, 1], [0], [0]>} : vector<2x8x32xf32>, vector<2x8x32xf32>, vector<2x8x8xf32> -> vector<2x8x8xf32>
      "tpu.trace_stop"() : () -> ()
      %cst_48 = arith.constant dense<0xFF800000> : vector<2x8xf32>
      %94 = vector.multi_reduction <maximumf>, %93, %cst_48 [2] : vector<2x8x8xf32> to vector<2x8xf32>
      %95 = vector.shape_cast %94 : vector<2x8xf32> to vector<2x8x1xf32>
      %96 = vector.broadcast %95 : vector<2x8x1xf32> to vector<2x8x8xf32>
      %97 = arith.subf %93, %96 : vector<2x8x8xf32>
      %98 = math.exp %97 : vector<2x8x8xf32>
      %cst_49 = arith.constant dense<0.000000e+00> : vector<2x8xf32>
      %99 = vector.multi_reduction <add>, %98, %cst_49 [2] : vector<2x8x8xf32> to vector<2x8xf32>
      %100 = vector.shape_cast %99 : vector<2x8xf32> to vector<2x8x1xf32>
      %101 = vector.broadcast %100 : vector<2x8x1xf32> to vector<2x8x8xf32>
      %102 = arith.divf %98, %101 : vector<2x8x8xf32>
      "tpu.trace_start"() <{level = 10 : i32, message = "bqk,bkd->bqd"}> : () -> ()
      %cst_50 = arith.constant dense<0.000000e+00> : vector<2x8x32xf32>
      %103 = tpu.matmul %102, %92, %cst_50 {dimension_numbers = #tpu.dot_dimension_numbers<[2], [1], [1], [2], [0, 0, 0, 1, 1, 2], [0], [0]>} : vector<2x8x8xf32>, vector<2x8x32xf32>, vector<2x8x32xf32> -> vector<2x8x32xf32>
      "tpu.trace_stop"() : () -> ()
      %104 = vector.shape_cast %103 : vector<2x8x32xf32> to vector<16x32xf32>
      %105 = arith.addf %85, %104 : vector<16x32xf32>
      %c2 = arith.constant 2 : index
      %c0_51 = arith.constant 0 : index
      %106 = vector.load %arg3[%c2, %c0_51] : memref<4x32xf32, #tpu.memory_space<vmem>>, vector<1x32xf32>
      %107 = vector.broadcast %106 : vector<1x32xf32> to vector<16x32xf32>
      %108 = arith.mulf %61, %107 : vector<16x32xf32>
      %109 = vector.shape_cast %108 : vector<16x32xf32> to vector<2x8x32xf32>
      %110 = vector.broadcast %106 : vector<1x32xf32> to vector<16x32xf32>
      %111 = arith.mulf %62, %110 : vector<16x32xf32>
      %112 = vector.shape_cast %111 : vector<16x32xf32> to vector<2x8x32xf32>
      "tpu.trace_start"() <{level = 10 : i32, message = "bqd,bkd->bqk"}> : () -> ()
      %cst_52 = arith.constant dense<0.000000e+00> : vector<2x8x8xf32>
      %113 = tpu.matmul %109, %64, %cst_52 {dimension_numbers = #tpu.dot_dimension_numbers<[2], [2], [1], [1], [0, 0, 0, 1, 1, 1], [0], [0]>} : vector<2x8x32xf32>, vector<2x8x32xf32>, vector<2x8x8xf32> -> vector<2x8x8xf32>
      "tpu.trace_stop"() : () -> ()
      %cst_53 = arith.constant dense<0xFF800000> : vector<2x8xf32>
      %114 = vector.multi_reduction <maximumf>, %113, %cst_53 [2] : vector<2x8x8xf32> to vector<2x8xf32>
      %115 = vector.shape_cast %114 : vector<2x8xf32> to vector<2x8x1xf32>
      %116 = vector.broadcast %115 : vector<2x8x1xf32> to vector<2x8x8xf32>
      %117 = arith.subf %113, %116 : vector<2x8x8xf32>
      %118 = math.exp %117 : vector<2x8x8xf32>
      %cst_54 = arith.constant dense<0.000000e+00> : vector<2x8xf32>
      %119 = vector.multi_reduction <add>, %118, %cst_54 [2] : vector<2x8x8xf32> to vector<2x8xf32>
      %120 = vector.shape_cast %119 : vector<2x8xf32> to vector<2x8x1xf32>
      %121 = vector.broadcast %120 : vector<2x8x1xf32> to vector<2x8x8xf32>
      %122 = arith.divf %118, %121 : vector<2x8x8xf32>
      "tpu.trace_start"() <{level = 10 : i32, message = "bqk,bkd->bqd"}> : () -> ()
      %cst_55 = arith.constant dense<0.000000e+00> : vector<2x8x32xf32>
      %123 = tpu.matmul %122, %112, %cst_55 {dimension_numbers = #tpu.dot_dimension_numbers<[2], [1], [1], [2], [0, 0, 0, 1, 1, 2], [0], [0]>} : vector<2x8x8xf32>, vector<2x8x32xf32>, vector<2x8x32xf32> -> vector<2x8x32xf32>
      "tpu.trace_stop"() : () -> ()
      %124 = vector.shape_cast %123 : vector<2x8x32xf32> to vector<16x32xf32>
      %125 = arith.addf %105, %124 : vector<16x32xf32>
      %c3 = arith.constant 3 : index
      %c0_56 = arith.constant 0 : index
      %126 = vector.load %arg3[%c3, %c0_56] : memref<4x32xf32, #tpu.memory_space<vmem>>, vector<1x32xf32>
      %127 = vector.broadcast %126 : vector<1x32xf32> to vector<16x32xf32>
      %128 = arith.mulf %61, %127 : vector<16x32xf32>
      %129 = vector.shape_cast %128 : vector<16x32xf32> to vector<2x8x32xf32>
      %130 = vector.broadcast %126 : vector<1x32xf32> to vector<16x32xf32>
      %131 = arith.mulf %62, %130 : vector<16x32xf32>
      %132 = vector.shape_cast %131 : vector<16x32xf32> to vector<2x8x32xf32>
      "tpu.trace_start"() <{level = 10 : i32, message = "bqd,bkd->bqk"}> : () -> ()
      %cst_57 = arith.constant dense<0.000000e+00> : vector<2x8x8xf32>
      %133 = tpu.matmul %129, %64, %cst_57 {dimension_numbers = #tpu.dot_dimension_numbers<[2], [2], [1], [1], [0, 0, 0, 1, 1, 1], [0], [0]>} : vector<2x8x32xf32>, vector<2x8x32xf32>, vector<2x8x8xf32> -> vector<2x8x8xf32>
      "tpu.trace_stop"() : () -> ()
      %cst_58 = arith.constant dense<0xFF800000> : vector<2x8xf32>
      %134 = vector.multi_reduction <maximumf>, %133, %cst_58 [2] : vector<2x8x8xf32> to vector<2x8xf32>
      %135 = vector.shape_cast %134 : vector<2x8xf32> to vector<2x8x1xf32>
      %136 = vector.broadcast %135 : vector<2x8x1xf32> to vector<2x8x8xf32>
      %137 = arith.subf %133, %136 : vector<2x8x8xf32>
      %138 = math.exp %137 : vector<2x8x8xf32>
      %cst_59 = arith.constant dense<0.000000e+00> : vector<2x8xf32>
      %139 = vector.multi_reduction <add>, %138, %cst_59 [2] : vector<2x8x8xf32> to vector<2x8xf32>
      %140 = vector.shape_cast %139 : vector<2x8xf32> to vector<2x8x1xf32>
      %141 = vector.broadcast %140 : vector<2x8x1xf32> to vector<2x8x8xf32>
      %142 = arith.divf %138, %141 : vector<2x8x8xf32>
      "tpu.trace_start"() <{level = 10 : i32, message = "bqk,bkd->bqd"}> : () -> ()
      %cst_60 = arith.constant dense<0.000000e+00> : vector<2x8x32xf32>
      %143 = tpu.matmul %142, %132, %cst_60 {dimension_numbers = #tpu.dot_dimension_numbers<[2], [1], [1], [2], [0, 0, 0, 1, 1, 2], [0], [0]>} : vector<2x8x8xf32>, vector<2x8x32xf32>, vector<2x8x32xf32> -> vector<2x8x32xf32>
      "tpu.trace_stop"() : () -> ()
      %144 = vector.shape_cast %143 : vector<2x8x32xf32> to vector<16x32xf32>
      %145 = arith.addf %125, %144 : vector<16x32xf32>
      %cst_61 = arith.constant dense<0.000000e+00> : vector<16x32xf32>
      %146 = tpu.matmul %145, %30, %cst_61 {dimension_numbers = #tpu.dot_dimension_numbers<[1], [0], [0], [1], [0, 0, 1, 1], [], []>} : vector<16x32xf32>, vector<32x32xf32>, vector<16x32xf32> -> vector<16x32xf32>
      %147 = vector.broadcast %33 : vector<1x32xf32> to vector<16x32xf32>
      %148 = arith.addf %146, %147 : vector<16x32xf32>
      %149 = arith.addf %arg20, %148 : vector<16x32xf32>
      %cst_62 = arith.constant dense<0.000000e+00> : vector<16xf32>
      %150 = vector.multi_reduction <add>, %149, %cst_62 [1] : vector<16x32xf32> to vector<16xf32>
      %151 = vector.shape_cast %150 : vector<16xf32> to vector<16x1xf32>
      %cst_63 = arith.constant 3.200000e+01 : f32
      %152 = vector.broadcast %cst_63 : f32 to vector<16x1xf32>
      %153 = arith.divf %151, %152 : vector<16x1xf32>
      %154 = vector.broadcast %153 : vector<16x1xf32> to vector<16x32xf32>
      %155 = arith.subf %149, %154 : vector<16x32xf32>
      %156 = arith.mulf %155, %155 : vector<16x32xf32>
      %cst_64 = arith.constant dense<0.000000e+00> : vector<16xf32>
      %157 = vector.multi_reduction <add>, %156, %cst_64 [1] : vector<16x32xf32> to vector<16xf32>
      %158 = vector.shape_cast %157 : vector<16xf32> to vector<16x1xf32>
      %cst_65 = arith.constant 3.200000e+01 : f32
      %159 = vector.broadcast %cst_65 : f32 to vector<16x1xf32>
      %160 = arith.divf %158, %159 : vector<16x1xf32>
      %cst_66 = arith.constant 9.99999974E-6 : f32
      %161 = vector.broadcast %cst_66 : f32 to vector<16x1xf32>
      %162 = arith.addf %160, %161 : vector<16x1xf32>
      %163 = math.rsqrt %162 : vector<16x1xf32>
      %164 = vector.broadcast %163 : vector<16x1xf32> to vector<16x32xf32>
      %165 = arith.mulf %155, %164 : vector<16x32xf32>
      %166 = vector.broadcast %36 : vector<1x32xf32> to vector<16x32xf32>
      %167 = arith.mulf %165, %166 : vector<16x32xf32>
      %168 = vector.broadcast %39 : vector<1x32xf32> to vector<16x32xf32>
      %169 = arith.addf %167, %168 : vector<16x32xf32>
      %cst_67 = arith.constant dense<0.000000e+00> : vector<16x128xf32>
      %170 = tpu.matmul %169, %48, %cst_67 {dimension_numbers = #tpu.dot_dimension_numbers<[1], [0], [0], [1], [0, 0, 1, 1], [], []>} : vector<16x32xf32>, vector<32x128xf32>, vector<16x128xf32> -> vector<16x128xf32>
      %171 = vector.broadcast %51 : vector<1x128xf32> to vector<16x128xf32>
      %172 = arith.addf %170, %171 : vector<16x128xf32>
      %cst_68 = arith.constant 0.000000e+00 : f32
      %173 = vector.broadcast %cst_68 : f32 to vector<16x128xf32>
      %174 = arith.maximumf %172, %173 : vector<16x128xf32>
      %cst_69 = arith.constant dense<0.000000e+00> : vector<16x32xf32>
      %175 = tpu.matmul %174, %54, %cst_69 {dimension_numbers = #tpu.dot_dimension_numbers<[1], [0], [0], [1], [0, 0, 1, 1], [], []>} : vector<16x128xf32>, vector<128x32xf32>, vector<16x32xf32> -> vector<16x32xf32>
      %176 = vector.broadcast %57 : vector<1x32xf32> to vector<16x32xf32>
      %177 = arith.addf %175, %176 : vector<16x32xf32>
      %178 = arith.addf %169, %177 : vector<16x32xf32>
      %cst_70 = arith.constant dense<0.000000e+00> : vector<16xf32>
      %179 = vector.multi_reduction <add>, %178, %cst_70 [1] : vector<16x32xf32> to vector<16xf32>
      %180 = vector.shape_cast %179 : vector<16xf32> to vector<16x1xf32>
      %cst_71 = arith.constant 3.200000e+01 : f32
      %181 = vector.broadcast %cst_71 : f32 to vector<16x1xf32>
      %182 = arith.divf %180, %181 : vector<16x1xf32>
      %183 = vector.broadcast %182 : vector<16x1xf32> to vector<16x32xf32>
      %184 = arith.subf %178, %183 : vector<16x32xf32>
      %185 = arith.mulf %184, %184 : vector<16x32xf32>
      %cst_72 = arith.constant dense<0.000000e+00> : vector<16xf32>
      %186 = vector.multi_reduction <add>, %185, %cst_72 [1] : vector<16x32xf32> to vector<16xf32>
      %187 = vector.shape_cast %186 : vector<16xf32> to vector<16x1xf32>
      %cst_73 = arith.constant 3.200000e+01 : f32
      %188 = vector.broadcast %cst_73 : f32 to vector<16x1xf32>
      %189 = arith.divf %187, %188 : vector<16x1xf32>
      %cst_74 = arith.constant 9.99999974E-6 : f32
      %190 = vector.broadcast %cst_74 : f32 to vector<16x1xf32>
      %191 = arith.addf %189, %190 : vector<16x1xf32>
      %192 = math.rsqrt %191 : vector<16x1xf32>
      %193 = vector.broadcast %192 : vector<16x1xf32> to vector<16x32xf32>
      %194 = arith.mulf %184, %193 : vector<16x32xf32>
      %195 = vector.broadcast %42 : vector<1x32xf32> to vector<16x32xf32>
      %196 = arith.mulf %194, %195 : vector<16x32xf32>
      %197 = vector.broadcast %45 : vector<1x32xf32> to vector<16x32xf32>
      %198 = arith.addf %196, %197 : vector<16x32xf32>
      scf.yield %198 : vector<16x32xf32>
    }
    %c4_i32_5 = arith.constant 4 : i32
    %9 = vector.shape_cast %8 : vector<16x32xf32> to vector<2x8x32xf32>
    %cst = arith.constant dense<0.000000e+00> : vector<2x32xf32>
    %10 = vector.multi_reduction <add>, %9, %cst [1] : vector<2x8x32xf32> to vector<2x32xf32>
    %cst_6 = arith.constant 8.000000e+00 : f32
    %11 = vector.broadcast %cst_6 : f32 to vector<2x32xf32>
    %12 = arith.divf %10, %11 : vector<2x32xf32>
    %c0_7 = arith.constant 0 : index
    %c0_8 = arith.constant 0 : index
    %13 = vector.load %arg16[%c0_7, %c0_8] : memref<1x32xf32, #tpu.memory_space<vmem>>, vector<1x32xf32>
    %14 = vector.broadcast %13 : vector<1x32xf32> to vector<2x32xf32>
    %15 = arith.mulf %12, %14 : vector<2x32xf32>
    %cst_9 = arith.constant dense<0.000000e+00> : vector<2xf32>
    %16 = vector.multi_reduction <add>, %15, %cst_9 [1] : vector<2x32xf32> to vector<2xf32>
    %17 = vector.shape_cast %16 : vector<2xf32> to vector<2x1xf32>
    %c0_10 = arith.constant 0 : index
    %c0_11 = arith.constant 0 : index
    %18 = vector.load %arg17[%c0_10, %c0_11] : memref<1x1xf32, #tpu.memory_space<vmem>>, vector<1x1xf32>
    %19 = vector.broadcast %18 : vector<1x1xf32> to vector<2x1xf32>
    %20 = arith.addf %17, %19 : vector<2x1xf32>
    %c0_12 = arith.constant 0 : index
    %c0_13 = arith.constant 0 : index
    %21 = vector.load %arg18[%c0_12, %c0_13] : memref<2x1xf32, #tpu.memory_space<vmem>>, vector<2x1xf32>
    tpu.vector_store %arg18[%c0_12, %c0_13], %20 {strides = array<i32>} : memref<2x1xf32, #tpu.memory_space<vmem>>, vector<2x1xf32>,
    return
  }
}

</mosaic_0001>

<bundles_post_ra>
// kernel: time_series_transformer.1
= control target key start
LH: loop header
LB: loop body
LE: loop exit
PB: predicated region body
PF: predicated region fallthrough
CT: control target
= control target key end

     0   :  { %v1264_v0 = vmov 0   ;;  %s1687_s0 = inlined_call_operand.vmem [shape: f32[16,1], index: 0, kind: input, shape index: {}]   ;;  %s1688_s1 = inlined_call_operand.vmem [shape: f32[1,32], index: 1, kind: input, shape index: {}]   ;;  %s1689_s3 = inlined_call_operand.vmem [shape: f32[4,32], index: 3, kind: input, shape index: {}]   ;;  %s1690_s4 = inlined_call_operand.vmem [shape: f32[4,32,96], index: 4, kind: input, shape index: {}]   ;;  %s1691_s5 = inlined_call_operand.vmem [shape: f32[4,1,96], index: 5, kind: input, shape index: {}]   ;;  %s1692_s6 = inlined_call_operand.vmem [shape: f32[4,32,32], index: 6, kind: input, shape index: {}]   ;;  %s1693_s7 = inlined_call_operand.vmem [shape: f32[4,1,32], index: 7, kind: input, shape index: {}]   ;;  %s1694_s8 = inlined_call_operand.vmem [shape: f32[4,1,32], index: 8, kind: input, shape index: {}]   ;;  %s1695_s9 = inlined_call_operand.vmem [shape: f32[4,1,32], index: 9, kind: input, shape index: {}]   ;;  %s1696_s10 = inlined_call_operand.vmem [shape: f32[4,1,32], index: 10, kind: input, shape index: {}]   ;;  %s1697_s11 = inlined_call_operand.vmem [shape: f32[4,1,32], index: 11, kind: input, shape index: {}]   ;;  %s1698_s12 = inlined_call_operand.vmem [shape: f32[4,32,128], index: 12, kind: input, shape index: {}]   ;;  %s1699_s13 = inlined_call_operand.vmem [shape: f32[4,1,128], index: 13, kind: input, shape index: {}]   ;;  %s1700_s14 = inlined_call_operand.vmem [shape: f32[4,128,32], index: 14, kind: input, shape index: {}]   ;;  %s1701_s15 = inlined_call_operand.vmem [shape: f32[4,1,32], index: 15, kind: input, shape index: {}]   ;;  %s1702_s16 = inlined_call_operand.vmem [shape: f32[1,32], index: 16, kind: input, shape index: {}]   ;;  %s1703_s18 = inlined_call_operand.vmem [shape: f32[2,1], index: 18, kind: output, shape index: {}]   ;;  %s1704_s17 = inlined_call_operand.<no memory space> [shape: f32[1,1], index: 17, kind: input, shape index: {}]   ;;  %s1705_s2 = inlined_call_operand.vmem [shape: f32[16,32], index: 2, kind: input, shape index: {}]  }
   0x1   :  { %1708 = sst [smem:[#allocation3_spill]] %s1687_s0  ;;  %1175 = vset.pattern.permute.xlu0 %v1264_v0  ;;  %v23_v3 = vstv %s1704_s17  ;;  %v79_v5 = vld [vmem:[%s1705_s2] sm:$0xff]  ;;  %v80_v9 = vld [vmem:[%s1705_s2 + $0x8] sm:$0xff]  ;;  %s1386_s17 = smov 0  }
   0x2   :  { %1709 = sst [smem:[#allocation4_spill]] %s1688_s1  ;;  %24 = vst [vmem:[#allocation2] sm:$0x1] %v23_v3 }
   0x3   :  { %1710 = sst [smem:[#allocation5_spill]] %s1689_s3 }
   0x4   :  { %s1711_s29 = sld [smem:[#allocation3_spill]] }
   0x5   :  { %s1712_s22 = sld [smem:[#allocation4_spill]] }
   0xa   :  { %v61_v1 = vld [vmem:[%s1711_s29] sm:$0xff]  ;;  %v62_v2 = vld [vmem:[%s1711_s29 + $0x8] sm:$0xff] }
   0xb   :  { %66 = vperm.xlu0 %1175, %v61_v1   ;;  %v1176_v4 = vld [vmem:[%s1712_s22] ss:$0 sm:$0xff] }
  0x13   :  { %71 = vperm.xlu0 %1175, %v62_v2  }
  0x7d   :  { %v67_v6 = vpop.permute.xlu0 %66 }
  0x7e   :  { %v77_v7 = vmul.f32 %v1176_v4, %v67_v6 }
  0x80   :  { %v81_v8 = vadd.f32 %v79_v5, %v77_v7  }
  0x85   :  { %v72_v10 = vpop.permute.xlu0 %71 }
  0x86   :  { %v78_v11 = vmul.f32 %v1176_v4, %v72_v10 }
  0x88   :  { %v82_v12 = vadd.f32 %v80_v9, %v78_v11  }
  0x89 LB: > { %s1713_s27 = sld [smem:[#allocation5_spill]]  ;;  %s1401_s28 = sshll.u32 %s1262_s17, 5  ;;  %vm144_vm0 = vcmask 261120   ;;  %vm240_vm1 = vcmask 64512   ;;  %s1262_s17 = sphi %s1386_s17, %s88_s17   ;;  %v1258_v8 = vphi %v81_v8, %v1715_v8   ;;  %v1254_v12 = vphi %v82_v12, %v1714_v12  }
  0x8a   : > { %s1265_s29 = smov 64   ;;  %s92_s19 = scalar_lea.vmem %s1690_s4, %s1401_s28 }
  0x8b   : > { %v96_v14 = vld [vmem:[%s92_s19 + $0x18] sm:$0xff]  ;;  %v95_v15 = vld [vmem:[%s92_s19 + $0x10] sm:$0xff]  ;;  %s97_s21 = scalar_lea.vmem %s1691_s5, %s1262_s17  ;;  %v94_v16 = vld [vmem:[%s92_s19 + $0x8] sm:$0xff]  ;;  %s1266_s22 = smov 96  }
  0x8c   : > { %163 = vmatpush.msra.mxu0 %v96_v14  ;;  %v93_v17 = vld [vmem:[%s92_s19] sm:$0xff]  ;;  %s104_s0 = scalar_lea.vmem %s1693_s7, %s1262_s17  ;;  %s99_s20 = scalar_lea.vmem %s1692_s6, %s1401_s28 }
  0x8d   : > { %v1183_v18 = vld [vmem:[%s97_s21] ss:$0 sm:$0xff]  ;;  %s106_s3 = scalar_lea.vmem %s1694_s8, %s1262_s17  ;;  %s108_s25 = scalar_lea.vmem %s1695_s9, %s1262_s17 }
  0x8e   : > { %164 = vmatpush.msra.mxu0 %v95_v15  ;;  %s114_s19 = scalar_lea.vmem %s1698_s12, %s1401_s28  ;;  %s1115_s1 = sshll.u32 %s1262_s17, 7 }
  0x8f   : > { %v1182_v13 = vld [vmem:[%s1713_s27] ss:$0 sm:$0xff]  ;;  %v1431_v26 = vld [vmem:[%s1713_s27 + $0x2] ss:$0 sm:$0xff]  ;;  %v1445_v29 = vld [vmem:[%s1713_s27 + $0x1] ss:$0 sm:$0xff]  ;;  %s139_s26 = scalar_lea.vmem %s1701_s15, %s1262_s17 }
  0x90   : > { %179 = vrot.lane.b32.xlu2 %v1182_v13, %s1265_s29  ;;  %165 = vmatpush.msra.mxu0 %v94_v16  ;;  %v1450_v30 = vld [vmem:[%s1713_s27 + $0x3] ss:$0 sm:$0xff] }
  0x92   : > { %166 = vmatpush.msra.mxu0 %v93_v17 }
  0x93   : > { %1116 = vmatmul.msk.f32.vlgmr.msra.gmra.mxu0 %vm144_vm0, %v1258_v8 }
  0x9b   : > { %1117 = vmatmul.msk.f32.gmra.mxu0 %vm144_vm0, %v1254_v12 }
  0xea   : > { %v180_v37 = vpop.permute.xlu2 %179 }
 0x110   : > { %v168_v19 = vpop.f32.mrf.mxu0 }
 0x111   : > { %v1416_v20 = vadd.f32 %v1183_v18, %v168_v19 }
 0x113   : > { %185 = vrot.lane.b32.xlu0 %v1416_v20, %s1266_s22  ;;  %v176_v24 = vmul.f32 %v1182_v13, %v1416_v20  ;;  %v182_v38 = vmul.f32 %v180_v37, %v1416_v20  ;;  %v347_v14 = vmul.f32 %v1445_v29, %v1416_v20 }
 0x118   : > { %v171_v21 = vpop.f32.mrf.mxu0 }
 0x119   : > { %v1419_v22 = vadd.f32 %v1183_v18, %v171_v21 }
 0x11b   : > { %213 = vrot.lane.b32.xlu0 %v1419_v22, %s1266_s22  ;;  %v177_v27 = vmul.f32 %v1182_v13, %v1419_v22  ;;  %v508_v28 = vmul.f32 %v1431_v26, %v1419_v22  ;;  %v348_v31 = vmul.f32 %v1445_v29, %v1419_v22  ;;  %v668_v32 = vmul.f32 %v1450_v30, %v1419_v22  ;;  %s1604_s22 = scalar_lea.vmem %s1700_s14, %s1115_s1  ;;  %s110_s1 = scalar_lea.vmem %s1696_s10, %s1262_s17 }
 0x11c   : > { %v183_v39 = vmul.f32 %v180_v37, %v1419_v22 }
 0x185   : > { %v1422_v23 = vpop.permute.xlu0 %185 }
 0x186   : > { %1118 = vmatpush.xpose.msk.msra.mxu1 %vm144_vm0, %v1422_v23 }
 0x189   : > { %1119 = vmatmul.msk.f32.vlgmr.msra.gmra.mxu1 %vm144_vm0, %v176_v24 }
 0x18d   : > { %v214_v25 = vpop.permute.xlu0 %213 }
 0x18e   : > { %1120 = vmatpush.xpose.msk.msra.mxu2 %vm144_vm0, %v214_v25  ;;  %1132 = vmatpush.xpose.msk.msrb.mxu0 %vm144_vm0, %v214_v25 }
 0x191   : > { %1121 = vmatmul.msk.f32.vlgmr.msra.gmra.mxu2 %vm144_vm0, %v177_v27  ;;  %1133 = vmatmul.msk.f32.vlgmr.msrb.gmra.mxu0 %vm144_vm0, %v508_v28 }
 0x192   : > { %1126 = vmatpush.xpose.msk.msrb.mxu2 %vm144_vm0, %v214_v25  ;;  %1138 = vmatpush.xpose.msk.msra.mxu0 %vm144_vm0, %v214_v25 }
 0x199   : > { %1127 = vmatmul.msk.f32.vlgmr.msrb.gmra.mxu2 %vm144_vm0, %v348_v31  ;;  %1139 = vmatmul.msk.f32.vlgmr.msra.gmra.mxu0 %vm144_vm0, %v668_v32 }
 0x206   : > { %v209_v33 = vpop.f32.mrf.mxu1 }
 0x207   : > { %v241_v34 = vsel %vm240_vm1, %v209_v33, -inf }
 0x208   : > { %242 = vmax.xlane.f32.xlu1 %v241_v34 }
 0x20e   : > { %v558_v19 = vpop.f32.mrf.mxu0 }
 0x20f   : > { %v564_v21 = vsel %vm240_vm1, %v558_v19, -inf }
 0x214   : > { %v237_v35 = vpop.f32.mrf.mxu2 }
 0x215   : > { %v244_v36 = vsel %vm240_vm1, %v237_v35, -inf }
 0x216   : > { %245 = vmax.xlane.f32.xlu1 %v244_v36  ;;  %v1483_v24 = vpop.f32.mrf.mxu0 }
 0x217   : > { %v724_v25 = vsel %vm240_vm1, %v1483_v24, -inf }
 0x22f   : > { %290 = vrot.lane.b32.xlu1 %v182_v38, %s1265_s29 }
 0x237   : > { %317 = vrot.lane.b32.xlu1 %v183_v39, %s1265_s29 }
 0x27b   : > { %v243_v40 = vpop.xlane.xlu1 %242 }
 0x27c   : > { %v247_v41 = vsub.f32 %v209_v33, %v243_v40 }
 0x27e   : > { %v249_v42 = vmul.f32 1.442695, %v247_v41 }
 0x280   : > { %1194 = vpow2.f32 %v249_v42 }
 0x286   : > { %v1195_v43 = vpop.eup %1194 }
 0x287   : > { %v253_v44 = vsel %vm240_vm1, %v1195_v43, 0.0 }
 0x288   : > { %254 = vadd.xlane.f32.xlu2 %v253_v44 }
 0x289   : > { %v246_v45 = vpop.xlane.xlu1 %245 }
 0x28a   : > { %v248_v46 = vsub.f32 %v237_v35, %v246_v45  ;;  %v398_v35 = vpop.f32.mrf.mxu2 }
 0x28b   : > { %v404_v36 = vsel %vm240_vm1, %v398_v35, -inf }
 0x28c   : > { %v251_v47 = vmul.f32 1.442695, %v248_v46 }
 0x28e   : > { %1196 = vpow2.f32 %v251_v47 }
 0x294   : > { %v1197_v48 = vpop.eup %1196 }
 0x295   : > { %v256_v49 = vsel %vm240_vm1, %v1197_v48, 0.0 }
 0x296   : > { %257 = vadd.xlane.f32.xlu0 %v256_v49 }
 0x2a0   : > { %350 = vrot.lane.b32.xlu2 %v1445_v29, %s1265_s29 }
 0x2a1   : > { %v291_v50 = vpop.permute.xlu1 %290 }
 0x2a2   : > { %311 = vmatpush.msrb.mxu1 %v291_v50  ;;  %v507_v50 = vmul.f32 %v1431_v26, %v1416_v20 }
 0x2a8   : > { %510 = vrot.lane.b32.xlu2 %v1431_v26, %s1265_s29 }
 0x2a9   : > { %v318_v51 = vpop.permute.xlu1 %317 }
 0x2aa   : > { %338 = vmatpush.msra.mxu1 %v318_v51  ;;  %v667_v51 = vmul.f32 %v1450_v30, %v1416_v20 }
 0x2fb   : > { %v255_v52 = vpop.xlane.xlu2 %254 }
 0x2fc   : > { %1198 = vrcp.f32 %v255_v52  ;;  %v270_v57 = vand.u32 2147483648, %v255_v52  ;;  %v268_v58 = vand.u32 2147483647, %v255_v52  ;;  %vm264_vm3 = vweird.f32 %v255_v52 }
 0x2fe   : > { %v271_v61 = vor.u32 1.1754944e-38, %v270_v57  ;;  %vm269_vm5 = vcmp.eq.f32.partialorder %v268_v58, 8.507059e+37 }
 0x302   : > { %v1199_v53 = vpop.eup %1198 }
 0x303   : > { %v260_v54 = vmul.f32 %v1199_v53, %v255_v52  ;;  %vm265_vm2 = vweird.f32 %v1199_v53  ;;  %v1488_v33 = vpop.permute.xlu2 %350 }
 0x304   : > { %vm266_vm4 = vmor %vm264_vm3, %vm265_vm2  ;;  %v353_v34 = vmul.f32 %v1488_v33, %v1416_v20 }
 0x305   : > { %v261_v55 = vsub.f32 1.0, %v260_v54 }
 0x307   : > { %v262_v56 = vmul.f32 %v1199_v53, %v261_v55 }
 0x309   : > { %v263_v59 = vadd.f32 %v1199_v53, %v262_v56  ;;  %v258_v60 = vpop.xlane.xlu0 %257 }
 0x30a   : > { %1200 = vrcp.f32 %v258_v60  ;;  %v285_v4 = vand.u32 2147483648, %v258_v60  ;;  %v283_v6 = vand.u32 2147483647, %v258_v60  ;;  %vm279_vm7 = vweird.f32 %v258_v60 }
 0x30b   : > { %v267_v62 = vsel %vm266_vm4, %v1199_v53, %v263_v59 }
 0x30c   : > { %v272_v63 = vsel %vm269_vm5, %v271_v61, %v267_v62  ;;  %v286_v9 = vor.u32 1.1754944e-38, %v285_v4  ;;  %vm284_vm9 = vcmp.eq.f32.partialorder %v283_v6, 8.507059e+37 }
 0x30d   : > { %v273_v0 = vmul.f32 %v1195_v43, %v272_v63 }
 0x30f   : > { %1122 = vmatmul.msk.f32.vlgmr.msrb.gmra.mxu1 %vm240_vm1, %v273_v0 }
 0x310   : > { %v1201_v1 = vpop.eup %1200  ;;  %1124 = vmatpush.xpose.msk.msrb.mxu1 %vm144_vm0, %v1422_v23 }
 0x311   : > { %v275_v2 = vmul.f32 %v1201_v1, %v258_v60  ;;  %vm280_vm6 = vweird.f32 %v1201_v1 }
 0x312   : > { %vm281_vm8 = vmor %vm279_vm7, %vm280_vm6 }
 0x313   : > { %v276_v3 = vsub.f32 1.0, %v275_v2 }
 0x315   : > { %v277_v5 = vmul.f32 %v1201_v1, %v276_v3 }
 0x317   : > { %v278_v7 = vadd.f32 %v1201_v1, %v277_v5 }
 0x319   : > { %v282_v10 = vsel %vm281_vm8, %v1201_v1, %v278_v7  ;;  %v511_v1 = vpop.permute.xlu2 %510 }
 0x31a   : > { %v287_v11 = vsel %vm284_vm9, %v286_v9, %v282_v10  ;;  %v514_v2 = vmul.f32 %v511_v1, %v1419_v22  ;;  %v513_v10 = vmul.f32 %v511_v1, %v1416_v20 }
 0x31b   : > { %v288_v13 = vmul.f32 %v1197_v48, %v287_v11  ;;  %v354_v11 = vmul.f32 %v1488_v33, %v1419_v22 }
 0x31d   : > { %1123 = vmatmul.msk.f32.vlgmr.msra.gmra.mxu1 %vm240_vm1, %v288_v13  ;;  %v1177_v13 = vpack.i.bf16 %v354_v11, %v513_v10 }
 0x325   : > { %1125 = vmatmul.msk.f32.vlgmr.msrb.gmra.mxu1 %vm144_vm0, %v347_v14 }
 0x38c   : > { %v1477_v15 = vpop.f32.mrf.mxu1 }
 0x39a   : > { %v1479_v16 = vpop.f32.mrf.mxu1 }
 0x3a2   : > { %v375_v17 = vpop.f32.mrf.mxu1 }
 0x3a3   : > { %v401_v18 = vsel %vm240_vm1, %v375_v17, -inf }
 0x3a4   : > { %402 = vmax.xlane.f32.xlu1 %v401_v18 }
 0x3ac   : > { %565 = vmax.xlane.f32.xlu1 %v564_v21 }
 0x3b4   : > { %725 = vmax.xlane.f32.xlu1 %v724_v25 }
 0x417   : > { %v403_v27 = vpop.xlane.xlu1 %402 }
 0x418   : > { %v407_v28 = vsub.f32 %v375_v17, %v403_v27 }
 0x41a   : > { %v409_v29 = vmul.f32 1.442695, %v407_v28 }
 0x41c   : > { %1202 = vpow2.f32 %v409_v29 }
 0x41f   : > { %v566_v60 = vpop.xlane.xlu1 %565 }
 0x420   : > { %v568_v61 = vsub.f32 %v558_v19, %v566_v60 }
 0x422   : > { %v1203_v31 = vpop.eup %1202  ;;  %v571_v62 = vmul.f32 1.442695, %v568_v61 }
 0x423   : > { %v413_v32 = vsel %vm240_vm1, %v1203_v31, 0.0 }
 0x424   : > { %414 = vadd.xlane.f32.xlu0 %v413_v32 }
 0x427   : > { %v726_v7 = vpop.xlane.xlu1 %725 }
 0x428   : > { %v728_v18 = vsub.f32 %v1483_v24, %v726_v7 }
 0x42a   : > { %v731_v21 = vmul.f32 1.442695, %v728_v18 }
 0x438   : > { %450 = vrot.lane.b32.xlu0 %v353_v34, %s1265_s29 }
 0x462   : > { %405 = vmax.xlane.f32.xlu0 %v404_v36 }
 0x497   : > { %v415_v37 = vpop.xlane.xlu0 %414 }
 0x498   : > { %1204 = vrcp.f32 %v415_v37  ;;  %v430_v41 = vand.u32 2147483648, %v415_v37  ;;  %v428_v43 = vand.u32 2147483647, %v415_v37  ;;  %vm424_vm11 = vweird.f32 %v415_v37 }
 0x49a   : > { %v431_v45 = vor.u32 1.1754944e-38, %v430_v41  ;;  %vm429_vm13 = vcmp.eq.f32.partialorder %v428_v43, 8.507059e+37 }
 0x49e   : > { %v1205_v38 = vpop.eup %1204 }
 0x49f   : > { %v420_v39 = vmul.f32 %v1205_v38, %v415_v37  ;;  %vm425_vm10 = vweird.f32 %v1205_v38 }
 0x4a0   : > { %vm426_vm12 = vmor %vm424_vm11, %vm425_vm10 }
 0x4a1   : > { %v421_v40 = vsub.f32 1.0, %v420_v39 }
 0x4a3   : > { %v422_v42 = vmul.f32 %v1205_v38, %v421_v40 }
 0x4a5   : > { %v423_v44 = vadd.f32 %v1205_v38, %v422_v42 }
 0x4a7   : > { %v427_v46 = vsel %vm426_vm12, %v1205_v38, %v423_v44 }
 0x4a8   : > { %v432_v47 = vsel %vm429_vm13, %v431_v45, %v427_v46 }
 0x4a9   : > { %v433_v48 = vmul.f32 %v1203_v31, %v432_v47 }
 0x4aa   : > { %v451_v49 = vpop.permute.xlu0 %450 }
 0x4ab   : > { %471 = vmatpush.msra.mxu2 %v451_v49 }
 0x4ac   : > { %1128 = vmatmul.msk.f32.vlgmr.msra.gmra.mxu2 %vm240_vm1, %v433_v48 }
 0x4ad   : > { %1130 = vmatpush.xpose.msk.msrb.mxu2 %vm144_vm0, %v1422_v23 }
 0x4b1   : > { %1136 = vmatpush.xpose.msk.msra.mxu2 %vm144_vm0, %v1422_v23 }
 0x4b4   : > { %1131 = vmatmul.msk.f32.vlgmr.msrb.gmra.mxu2 %vm144_vm0, %v507_v50 }
 0x4bc   : > { %1137 = vmatmul.msk.f32.vlgmr.msra.gmra.mxu2 %vm144_vm0, %v667_v51 }
 0x4d5   : > { %v406_v52 = vpop.xlane.xlu0 %405 }
 0x4d6   : > { %v408_v53 = vsub.f32 %v398_v35, %v406_v52 }
 0x4d8   : > { %v411_v54 = vmul.f32 1.442695, %v408_v53 }
 0x4da   : > { %1206 = vpow2.f32 %v411_v54 }
 0x4db   : > { %1208 = vpow2.f32 %v571_v62 }
 0x4e0   : > { %v1505_v55 = vpop.eup %1206 }
 0x4e1   : > { %v416_v56 = vsel %vm240_vm1, %v1505_v55, 0.0  ;;  %v1515_v63 = vpop.eup %1208 }
 0x4e2   : > { %417 = vadd.xlane.f32.xlu0 %v416_v56  ;;  %v576_v0 = vsel %vm240_vm1, %v1515_v63, 0.0 }
 0x52f   : > { %v1509_v23 = vpop.f32.mrf.mxu2 }
 0x537   : > { %v535_v26 = vpop.f32.mrf.mxu2 }
 0x538   : > { %v561_v57 = vsel %vm240_vm1, %v535_v26, -inf }
 0x539   : > { %562 = vmax.xlane.f32.xlu2 %v561_v57 }
 0x53f   : > { %v695_v58 = vpop.f32.mrf.mxu2 }
 0x540   : > { %v721_v59 = vsel %vm240_vm1, %v695_v58, -inf }
 0x541   : > { %722 = vmax.xlane.f32.xlu1 %v721_v59 }
 0x555   : > { %v418_v24 = vpop.xlane.xlu0 %417 }
 0x556   : > { %v445_v44 = vand.u32 2147483648, %v418_v24  ;;  %vm439_vm2 = vweird.f32 %v418_v24  ;;  %v443_v47 = vand.u32 2147483647, %v418_v24 }
 0x558   : > { %v446_v52 = vor.u32 1.1754944e-38, %v445_v44  ;;  %vm444_vm6 = vcmp.eq.f32.partialorder %v443_v47, 8.507059e+37 }
 0x55a   : > { %670 = vrot.lane.b32.xlu1 %v1450_v30, %s1265_s29 }
 0x584   : > { %577 = vadd.xlane.f32.xlu1 %v576_v0 }
 0x59d   : > { %637 = vrot.lane.b32.xlu1 %v514_v2, %s1265_s29 }
 0x5ac   : > { %v563_v3 = vpop.xlane.xlu2 %562 }
 0x5ad   : > { %v567_v4 = vsub.f32 %v535_v26, %v563_v3 }
 0x5af   : > { %v569_v5 = vmul.f32 1.442695, %v567_v4 }
 0x5b1   : > { %1210 = vpow2.f32 %v569_v5 }
 0x5b2   : > { %1212 = vpow2.f32 %v731_v21 }
 0x5b4   : > { %v723_v9 = vpop.xlane.xlu1 %722 }
 0x5b5   : > { %v727_v19 = vsub.f32 %v695_v58, %v723_v9 }
 0x5b7   : > { %v1521_v30 = vpop.eup %1210  ;;  %v729_v25 = vmul.f32 1.442695, %v727_v19 }
 0x5b8   : > { %v573_v6 = vsel %vm240_vm1, %v1521_v30, 0.0  ;;  %v1532_v27 = vpop.eup %1212 }
 0x5b9   : > { %574 = vadd.xlane.f32.xlu0 %v573_v6  ;;  %1214 = vpow2.f32 %v729_v25  ;;  %v736_v29 = vsel %vm240_vm1, %v1532_v27, 0.0 }
 0x5ba   : > { %1216 = vrcp.f32 %v418_v24 }
 0x5bf   : > { %v1534_v28 = vpop.eup %1214 }
 0x5c0   : > { %v1217_v33 = vpop.eup %1216 }
 0x5c1   : > { %v435_v34 = vmul.f32 %v1217_v33, %v418_v24  ;;  %vm440_vm14 = vweird.f32 %v1217_v33 }
 0x5c2   : > { %vm441_vm3 = vmor %vm439_vm2, %vm440_vm14 }
 0x5c3   : > { %v436_v36 = vsub.f32 1.0, %v435_v34 }
 0x5c5   : > { %v437_v39 = vmul.f32 %v1217_v33, %v436_v36 }
 0x5c7   : > { %v438_v43 = vadd.f32 %v1217_v33, %v437_v39 }
 0x5c9   : > { %v442_v50 = vsel %vm441_vm3, %v1217_v33, %v438_v43 }
 0x5ca   : > { %v447_v56 = vsel %vm444_vm6, %v446_v52, %v442_v50  ;;  %v1187_v52 = vld [vmem:[%s104_s0] ss:$0 sm:$0xff] }
 0x5cb   : > { %v448_v0 = vmul.f32 %v1505_v55, %v447_v56 }
 0x5cc   : > { %v671_v14 = vpop.permute.xlu1 %670 }
 0x5cd   : > { %v673_v17 = vmul.f32 %v671_v14, %v1416_v20  ;;  %1178 = vrot.lane.b32.xlu0 %v1177_v13, %s1265_s29  ;;  %v733_v20 = vsel %vm240_vm1, %v1534_v28, 0.0  ;;  %v674_v31 = vmul.f32 %v671_v14, %v1419_v22 }
 0x5cf   : > { %770 = vrot.lane.b32.xlu2 %v673_v17, %s1265_s29 }
 0x5f7   : > { %737 = vadd.xlane.f32.xlu0 %v736_v29  ;;  %v578_v32 = vpop.xlane.xlu1 %577 }
 0x5f8   : > { %734 = vadd.xlane.f32.xlu2 %v733_v20  ;;  %1218 = vrcp.f32 %v578_v32  ;;  %v605_v59 = vand.u32 2147483648, %v578_v32  ;;  %vm599_vm9 = vweird.f32 %v578_v32  ;;  %v603_v62 = vand.u32 2147483647, %v578_v32 }
 0x5fa   : > { %v606_v5 = vor.u32 1.1754944e-38, %v605_v59  ;;  %vm604_vm11 = vcmp.eq.f32.partialorder %v603_v62, 8.507059e+37 }
 0x5fe   : > { %v1219_v37 = vpop.eup %1218 }
 0x5ff   : > { %v595_v40 = vmul.f32 %v1219_v37, %v578_v32  ;;  %vm600_vm8 = vweird.f32 %v1219_v37 }
 0x600   : > { %vm601_vm10 = vmor %vm599_vm9, %vm600_vm8 }
 0x601   : > { %v596_v22 = vsub.f32 1.0, %v595_v40  ;;  %v103_v40 = vld [vmem:[%s99_s20 + $0x18] sm:$0xff] }
 0x602   : > { %846 = vmatpush.msrb.mxu2 %v103_v40 }
 0x603   : > { %v597_v51 = vmul.f32 %v1219_v37, %v596_v22  ;;  %v503_v22 = vadd.f32 %v1509_v23, %v1477_v15 }
 0x605   : > { %v598_v57 = vadd.f32 %v1219_v37, %v597_v51 }
 0x607   : > { %v602_v2 = vsel %vm601_vm10, %v1219_v37, %v598_v57 }
 0x608   : > { %v607_v6 = vsel %vm604_vm11, %v606_v5, %v602_v2 }
 0x609   : > { %v608_v7 = vmul.f32 %v1515_v63, %v607_v6 }
 0x60f   : > { %v638_v3 = vpop.permute.xlu1 %637 }
 0x610   : > { %797 = vrot.lane.b32.xlu2 %v674_v31, %s1265_s29  ;;  %s119_s29 = scalar_lea.vmem %s1699_s13, %s1262_s17 }
 0x629   : > { %v771_v4 = vpop.permute.xlu2 %770 }
 0x62c   : > { %v575_v35 = vpop.xlane.xlu0 %574 }
 0x62d   : > { %1220 = vrcp.f32 %v575_v35  ;;  %v590_v46 = vand.u32 2147483648, %v575_v35  ;;  %v588_v48 = vand.u32 2147483647, %v575_v35  ;;  %vm584_vm4 = vweird.f32 %v575_v35 }
 0x62f   : > { %v591_v53 = vor.u32 1.1754944e-38, %v590_v46  ;;  %vm589_vm7 = vcmp.eq.f32.partialorder %v588_v48, 8.507059e+37 }
 0x633   : > { %v1221_v38 = vpop.eup %1220 }
 0x634   : > { %v580_v41 = vmul.f32 %v1221_v38, %v575_v35  ;;  %vm585_vm15 = vweird.f32 %v1221_v38 }
 0x635   : > { %vm586_vm5 = vmor %vm584_vm4, %vm585_vm15 }
 0x636   : > { %v581_v42 = vsub.f32 1.0, %v580_v41  ;;  %v102_v41 = vld [vmem:[%s99_s20 + $0x10] sm:$0xff] }
 0x637   : > { %847 = vmatpush.msrb.mxu2 %v102_v41  ;;  %v130_v41 = vld [vmem:[%s1604_s22 + $0x38] sm:$0xff] }
 0x638   : > { %v582_v45 = vmul.f32 %v1221_v38, %v581_v42  ;;  %v100_v42 = vld [vmem:[%s99_s20] sm:$0xff] }
 0x63a   : > { %v583_v49 = vadd.f32 %v1221_v38, %v582_v45 }
 0x63c   : > { %v587_v54 = vsel %vm586_vm5, %v1221_v38, %v583_v49 }
 0x63d   : > { %v592_v26 = vsel %vm589_vm7, %v591_v53, %v587_v54 }
 0x63e   : > { %v593_v1 = vmul.f32 %v1521_v30, %v592_v26 }
 0x63f   : > { %v1179_v58 = vpop.permute.xlu0 %1178 }
 0x640   : > { %v1181_v60 = vunpack.i.h.bf16 %v1179_v58  ;;  %v1180_v61 = vunpack.i.l.bf16 %v1179_v58  ;;  %v1267_v58 = vmov 32.0  }
 0x642   : > { %498 = vmatpush.msra.mxu1 %v1181_v60  ;;  %631 = vmatpush.msra.mxu3 %v1180_v61 }
 0x643   : > { %1129 = vmatmul.msk.f32.vlgmr.msra.gmra.mxu1 %vm240_vm1, %v448_v0  ;;  %1134 = vmatmul.msk.f32.vlgmr.msra.gmra.mxu3 %vm240_vm1, %v593_v1 }
 0x644   : > { %658 = vmatpush.msrb.mxu1 %v638_v3  ;;  %791 = vmatpush.msrb.mxu3 %v771_v4 }
 0x64b   : > { %1135 = vmatmul.msk.f32.vlgmr.msrb.gmra.mxu1 %vm240_vm1, %v608_v7 }
 0x66a   : > { %v738_v55 = vpop.xlane.xlu0 %737 }
 0x66b   : > { %1222 = vrcp.f32 %v738_v55  ;;  %v735_v30 = vpop.xlane.xlu2 %734  ;;  %v765_v18 = vand.u32 2147483648, %v738_v55  ;;  %v763_v25 = vand.u32 2147483647, %v738_v55  ;;  %vm759_vm14 = vweird.f32 %v738_v55 }
 0x66c   : > { %1224 = vrcp.f32 %v735_v30  ;;  %v750_v29 = vand.u32 2147483648, %v735_v30  ;;  %v748_v20 = vand.u32 2147483647, %v735_v30  ;;  %vm744_vm2 = vweird.f32 %v735_v30 }
 0x66d   : > { %v766_v24 = vor.u32 1.1754944e-38, %v765_v18  ;;  %vm764_vm3 = vcmp.eq.f32.partialorder %v763_v25, 8.507059e+37  ;;  %1226 = vrcp.f32 %v1267_v58  ;;  %v136_v25 = vld [vmem:[%s1604_s22 + $0x68] sm:$0xff]  ;;  %v123_v58 = vld [vmem:[%s1604_s22] sm:$0xff] }
 0x66e   : > { %v751_v34 = vor.u32 1.1754944e-38, %v750_v29  ;;  %vm749_vm5 = vcmp.eq.f32.partialorder %v748_v20, 8.507059e+37  ;;  %v135_v20 = vld [vmem:[%s1604_s22 + $0x60] sm:$0xff] }
 0x671   : > { %v1223_v9 = vpop.eup %1222 }
 0x672   : > { %v1225_v10 = vpop.eup %1224  ;;  %v755_v11 = vmul.f32 %v1223_v9, %v738_v55  ;;  %vm760_vm12 = vweird.f32 %v1223_v9 }
 0x673   : > { %v740_v13 = vmul.f32 %v1225_v10, %v735_v30  ;;  %v798_v14 = vpop.permute.xlu2 %797  ;;  %vm745_vm13 = vweird.f32 %v1225_v10  ;;  %vm761_vm15 = vmor %vm759_vm14, %vm760_vm12  ;;  %v1227_v59 = vpop.eup %1226 }
 0x674   : > { %v756_v17 = vsub.f32 1.0, %v755_v11  ;;  %818 = vmatpush.msra.mxu1 %v798_v14  ;;  %vm746_vm4 = vmor %vm744_vm2, %vm745_vm13  ;;  %v866_v60 = vmul.f32 32.0, %v1227_v59  ;;  %v116_v11 = vld [vmem:[%s114_s19 + $0x8] sm:$0xff] }
 0x675   : > { %v741_v19 = vsub.f32 1.0, %v740_v13  ;;  %v115_v13 = vld [vmem:[%s114_s19] sm:$0xff] }
 0x676   : > { %v757_v21 = vmul.f32 %v1223_v9, %v756_v17  ;;  %v867_v61 = vsub.f32 1.0, %v866_v60 }
 0x677   : > { %v742_v63 = vmul.f32 %v1225_v10, %v741_v19  ;;  %v138_v19 = vld [vmem:[%s1604_s22 + $0x78] sm:$0xff] }
 0x678   : > { %v758_v31 = vadd.f32 %v1223_v9, %v757_v21  ;;  %v137_v21 = vld [vmem:[%s1604_s22 + $0x70] sm:$0xff]  ;;  %957 = vmatpush.msra.mxu3 %v138_v19 }
 0x679   : > { %v743_v32 = vadd.f32 %v1225_v10, %v742_v63 }
 0x67a   : > { %v762_v33 = vsel %vm761_vm15, %v1223_v9, %v758_v31  ;;  %v118_v9 = vld [vmem:[%s114_s19 + $0x18] sm:$0xff]  ;;  %958 = vmatpush.msra.mxu3 %v137_v21 }
 0x67b   : > { %v767_v35 = vsel %vm764_vm3, %v766_v24, %v762_v33  ;;  %v747_v36 = vsel %vm746_vm4, %v1225_v10, %v743_v32  ;;  %941 = vmatpush.msrb.mxu0 %v118_v9  ;;  %v117_v10 = vld [vmem:[%s114_s19 + $0x10] sm:$0xff]  ;;  %v134_v32 = vld [vmem:[%s1604_s22 + $0x58] sm:$0xff] }
 0x67c   : > { %v768_v37 = vmul.f32 %v1532_v27, %v767_v35  ;;  %v752_v38 = vsel %vm749_vm5, %v751_v34, %v747_v36  ;;  %v101_v27 = vld [vmem:[%s99_s20 + $0x8] sm:$0xff]  ;;  %959 = vmatpush.msra.mxu3 %v136_v25  ;;  %v133_v34 = vld [vmem:[%s1604_s22 + $0x50] sm:$0xff] }
 0x67d   : > { %v753_v39 = vmul.f32 %v1534_v28, %v752_v38  ;;  %848 = vmatpush.msrb.mxu2 %v101_v27  ;;  %942 = vmatpush.msrb.mxu0 %v117_v10  ;;  %v132_v36 = vld [vmem:[%s1604_s22 + $0x48] sm:$0xff]  ;;  %v131_v38 = vld [vmem:[%s1604_s22 + $0x40] sm:$0xff] }
 0x67e   : > { %1141 = vmatmul.msk.f32.vlgmr.msra.gmra.mxu1 %vm240_vm1, %v768_v37  ;;  %960 = vmatpush.msra.mxu3 %v135_v20 }
 0x67f   : > { %1140 = vmatmul.msk.f32.vlgmr.msrb.gmra.mxu3 %vm240_vm1, %v753_v39  ;;  %849 = vmatpush.msrb.mxu2 %v100_v42  ;;  %vm870_vm1 = vweird.f32 %v1227_v59 }
 0x680   : > { %943 = vmatpush.msrb.mxu0 %v116_v11  ;;  %961 = vmatpush.msra.mxu3 %v134_v32 }
 0x682   : > { %944 = vmatpush.msrb.mxu0 %v115_v13  ;;  %962 = vmatpush.msra.mxu3 %v133_v34 }
 0x684   : > { %963 = vmatpush.msra.mxu3 %v132_v36 }
 0x686   : > { %964 = vmatpush.msra.mxu3 %v131_v38 }
 0x688   : > { %965 = vmatpush.msra.mxu3 %v130_v41 }
 0x6c0   : > { %v500_v28 = vpop.f32.mrf.mxu1 }
 0x6c1   : > { %v504_v48 = vadd.f32 %v500_v28, %v1479_v16  ;;  %v1188_v28 = vld [vmem:[%s106_s3] ss:$0 sm:$0xff] }
 0x6c6   : > { %v633_v43 = vpop.f32.mrf.mxu3 }
 0x6c7   : > { %v663_v45 = vadd.f32 %v633_v43, %v503_v22  ;;  %v129_v43 = vld [vmem:[%s1604_s22 + $0x30] sm:$0xff] }
 0x6c8   : > { %v660_v44 = vpop.f32.mrf.mxu1  ;;  %966 = vmatpush.msra.mxu3 %v129_v43 }
 0x6c9   : > { %v664_v50 = vadd.f32 %v660_v44, %v504_v48 }
 0x6fb   : > { %v820_v49 = vpop.f32.mrf.mxu1 }
 0x6fc   : > { %v824_v51 = vadd.f32 %v820_v49, %v664_v50  ;;  %v127_v50 = vld [vmem:[%s1604_s22 + $0x20] sm:$0xff] }
 0x702   : > { %v793_v46 = vpop.f32.mrf.mxu3 }
 0x703   : > { %v823_v47 = vadd.f32 %v793_v46, %v663_v45  ;;  %v1189_v46 = vld [vmem:[%s108_s25] ss:$0 sm:$0xff] }
 0x705   : > { %1142 = vmatmul.msk.f32.vlgmr.msrb.gmra.mxu2 %vm144_vm0, %v823_v47  ;;  %v128_v47 = vld [vmem:[%s1604_s22 + $0x28] sm:$0xff] }
 0x706   : > { %967 = vmatpush.msra.mxu3 %v128_v47 }
 0x708   : > { %968 = vmatpush.msra.mxu3 %v127_v50 }
 0x70d   : > { %1143 = vmatmul.msk.f32.gmra.mxu2 %vm144_vm0, %v824_v51 }
 0x788   : > { %v851_v53 = vpop.f32.mrf.mxu2 }
 0x789   : > { %v852_v54 = vadd.f32 %v1187_v52, %v851_v53  ;;  %v126_v53 = vld [vmem:[%s1604_s22 + $0x18] sm:$0xff] }
 0x78a   : > { %969 = vmatpush.msra.mxu3 %v126_v53 }
 0x78b   : > { %v857_v56 = vadd.f32 %v1258_v8, %v852_v54  ;;  %v868_v8 = vmul.f32 %v1227_v59, %v867_v61 }
 0x78d   : > { %v859_v15 = vsel %vm144_vm0, %v857_v56, 0.0  ;;  %v869_v62 = vadd.f32 %v1227_v59, %v868_v8 }
 0x78e   : > { %860 = vadd.xlane.f32.xlu0 %v859_v15 }
 0x78f   : > { %v1573_v0 = vsel %vm870_vm1, %v1227_v59, %v869_v62  ;;  %v1190_v59 = vld [vmem:[%s119_s29] ss:$0 sm:$0xff] }
 0x790   : > { %v854_v23 = vpop.f32.mrf.mxu2 }
 0x791   : > { %v855_v26 = vadd.f32 %v1187_v52, %v854_v23 }
 0x793   : > { %v858_v16 = vadd.f32 %v1254_v12, %v855_v26 }
 0x795   : > { %v862_v57 = vsel %vm144_vm0, %v858_v16, 0.0 }
 0x796   : > { %863 = vadd.xlane.f32.xlu1 %v862_v57  ;;  %v124_v57 = vld [vmem:[%s1604_s22 + $0x8] sm:$0xff] }
 0x801   : > { %v861_v1 = vpop.xlane.xlu0 %860 }
 0x802   : > { %v872_v2 = vmul.f32 %v1573_v0, %v861_v1 }
 0x804   : > { %v1576_v12 = vsub.f32 %v857_v56, %v872_v2 }
 0x806   : > { %v876_v3 = vmul.f32 %v1576_v12, %v1576_v12 }
 0x808   : > { %v878_v4 = vsel %vm144_vm0, %v876_v3, 0.0 }
 0x809   : > { %879 = vadd.xlane.f32.xlu2 %v878_v4  ;;  %v864_v5 = vpop.xlane.xlu1 %863 }
 0x80a   : > { %v873_v6 = vmul.f32 %v1573_v0, %v864_v5 }
 0x80c   : > { %v1582_v7 = vsub.f32 %v858_v16, %v873_v6  ;;  %v125_v16 = vld [vmem:[%s1604_s22 + $0x10] sm:$0xff]  ;;  %s112_s22 = scalar_lea.vmem %s1697_s11, %s1262_s17  ;;  %s88_s17 = sadd.s32 1, %s1262_s17  }
 0x80d   : > { %970 = vmatpush.msra.mxu3 %v125_v16  ;;  %p85_p0 = scmp.ge.s32.totalorder %s88_s17, 4  }
 0x80e   : > { %v877_v55 = vmul.f32 %v1582_v7, %v1582_v7  ;;  %vm1072_vm5 = vcmask (%p85_p0), 254976   ;;  %vm1081_vm1 = vcmask (%p85_p0), 1024  }
 0x80f   : > { %971 = vmatpush.msra.mxu3 %v124_v57 }
 0x810   : > { %v881_v30 = vsel %vm144_vm0, %v877_v55, 0.0 }
 0x811   : > { %882 = vadd.xlane.f32.xlu0 %v881_v30  ;;  %972 = vmatpush.msra.mxu3 %v123_v58 }
 0x87c   : > { %v880_v14 = vpop.xlane.xlu2 %879 }
 0x87d   : > { %v884_v17 = vmul.f32 %v880_v14, %v1573_v0 }
 0x87f   : > { %v886_v18 = vadd.f32 1e-05, %v884_v17 }
 0x881   : > { %1228 = vrsqrt.f32 %v886_v18  ;;  %vm894_vm7 = vweird.f32 %v886_v18 }
 0x884   : > { %v883_v29 = vpop.xlane.xlu0 %882 }
 0x885   : > { %v885_v63 = vmul.f32 %v883_v29, %v1573_v0 }
 0x887   : > { %v1229_v31 = vpop.eup %1228  ;;  %v887_v24 = vadd.f32 1e-05, %v885_v63 }
 0x888   : > { %v889_v33 = vmul.f32 %v1229_v31, %v886_v18  ;;  %vm895_vm6 = vweird.f32 %v1229_v31 }
 0x889   : > { %1230 = vrsqrt.f32 %v887_v24  ;;  %vm896_vm8 = vmor %vm894_vm7, %vm895_vm6  ;;  %vm904_vm10 = vweird.f32 %v887_v24 }
 0x88a   : > { %v890_v35 = vmul.f32 %v1229_v31, %v889_v33 }
 0x88c   : > { %v891_v37 = vmul.f32 0.5, %v890_v35 }
 0x88e   : > { %v892_v39 = vsub.f32 1.5, %v891_v37 }
 0x88f   : > { %v1231_v40 = vpop.eup %1230 }
 0x890   : > { %v893_v27 = vmul.f32 %v1229_v31, %v892_v39  ;;  %v899_v42 = vmul.f32 %v1231_v40, %v887_v24  ;;  %vm905_vm9 = vweird.f32 %v1231_v40 }
 0x891   : > { %vm906_vm11 = vmor %vm904_vm10, %vm905_vm9 }
 0x892   : > { %v897_v22 = vsel %vm896_vm8, %v1229_v31, %v893_v27  ;;  %v900_v44 = vmul.f32 %v1231_v40, %v899_v42  ;;  %v1192_v27 = vld [vmem:[%s110_s1] ss:$0 sm:$0xff] }
 0x893   : > { %v908_v45 = vmul.f32 %v897_v22, %v1576_v12  ;;  %v1191_v12 = vld [vmem:[%s139_s26] ss:$0 sm:$0xff] }
 0x894   : > { %v901_v48 = vmul.f32 0.5, %v900_v44 }
 0x895   : > { %v913_v49 = vmul.f32 %v1188_v28, %v908_v45 }
 0x896   : > { %v902_v51 = vsub.f32 1.5, %v901_v48 }
 0x897   : > { %v918_v52 = vadd.f32 %v1189_v46, %v913_v49 }
 0x898   : > { %v903_v54 = vmul.f32 %v1231_v40, %v902_v51 }
 0x899   : > { %1144 = vmatmul.msk.f32.vlgmr.msrb.gmra.mxu0 %vm144_vm0, %v918_v52 }
 0x89a   : > { %v907_v56 = vsel %vm906_vm11, %v1231_v40, %v903_v54 }
 0x89b   : > { %v909_v15 = vmul.f32 %v907_v56, %v1582_v7 }
 0x89d   : > { %v914_v23 = vmul.f32 %v1188_v28, %v909_v15  ;;  %v1193_v28 = vld [vmem:[%s112_s22] ss:$0 sm:$0xff]  ;;  %v1268_v15 = vmov (%p85_p0), 8.0  }
 0x89f   : > { %v919_v26 = vadd.f32 %v1189_v46, %v914_v23 }
 0x8a1   : > { %1145 = vmatmul.msk.f32.gmra.mxu0 %vm144_vm0, %v919_v26 }
 0x916   : > { %v946_v60 = vpop.f32.mrf.mxu0 }
 0x917   : > { %v947_v61 = vadd.f32 %v1190_v59, %v946_v60 }
 0x919   : > { %v952_v8 = vmax.f32 %v947_v61, 0.0 }
 0x91b   : > { %973 = vmatmul.f32.vlgmr.msra.gmra.mxu3 %v952_v8 }
 0x91e   : > { %v949_v62 = vpop.f32.mrf.mxu0 }
 0x91f   : > { %v950_v1 = vadd.f32 %v1190_v59, %v949_v62 }
 0x921   : > { %v953_v2 = vmax.f32 %v950_v1, 0.0 }
 0x923   : > { %976 = vmatmul.f32.gmra.mxu3 %v953_v2 }
 0x99e   : > { %v974_v3 = vpop.f32.mrf.mxu3 }
 0x99f   : > { %v975_v4 = vadd.f32 %v1191_v12, %v974_v3 }
 0x9a1   : > { %v980_v5 = vadd.f32 %v975_v4, %v918_v52 }
 0x9a3   : > { %v982_v6 = vsel %vm144_vm0, %v980_v5, 0.0 }
 0x9a4   : > { %983 = vadd.xlane.f32.xlu0 %v982_v6 }
 0x9a6   : > { %v977_v7 = vpop.f32.mrf.mxu3 }
 0x9a7   : > { %v978_v55 = vadd.f32 %v1191_v12, %v977_v7 }
 0x9a9   : > { %v981_v30 = vadd.f32 %v978_v55, %v919_v26 }
 0x9ab   : > { %v985_v9 = vsel %vm144_vm0, %v981_v30, 0.0 }
 0x9ac   : > { %986 = vadd.xlane.f32.xlu0 %v985_v9 }
 0xa17   : > { %v984_v10 = vpop.xlane.xlu0 %983 }
 0xa18   : > { %v988_v11 = vmul.f32 %v984_v10, %v1573_v0 }
 0xa1a   : > { %v990_v13 = vsub.f32 %v980_v5, %v988_v11  ;;  %v1236_v5 = vld [vmem:[%s1702_s16] ss:$0 sm:$0xff] (%p85_p0) }
 0xa1c   : > { %v992_v14 = vmul.f32 %v990_v13, %v990_v13 }
 0xa1e   : > { %v994_v17 = vsel %vm144_vm0, %v992_v14, 0.0  ;;  %v1237_v14 = vld [vmem:[#allocation2] ss:$0 sm:$0xff] (%p85_p0) }
 0xa1f   : > { %995 = vadd.xlane.f32.xlu0 %v994_v17  ;;  %v987_v18 = vpop.xlane.xlu0 %986 }
 0xa20   : > { %v989_v19 = vmul.f32 %v987_v18, %v1573_v0 }
 0xa22   : > { %v991_v21 = vsub.f32 %v981_v30, %v989_v19 }
 0xa24   : > { %v993_v25 = vmul.f32 %v991_v21, %v991_v21 }
 0xa26   : > { %v997_v29 = vsel %vm144_vm0, %v993_v25, 0.0 }
 0xa27   : > { %998 = vadd.xlane.f32.xlu0 %v997_v29 }
 0xa92   : > { %v996_v63 = vpop.xlane.xlu0 %995 }
 0xa93   : > { %v1000_v20 = vmul.f32 %v996_v63, %v1573_v0 }
 0xa95   : > { %v1002_v31 = vadd.f32 1e-05, %v1000_v20 }
 0xa97   : > { %1232 = vrsqrt.f32 %v1002_v31  ;;  %vm1010_vm13 = vweird.f32 %v1002_v31 }
 0xa9a   : > { %v999_v24 = vpop.xlane.xlu0 %998 }
 0xa9b   : > { %v1001_v32 = vmul.f32 %v999_v24, %v1573_v0 }
 0xa9d   : > { %v1233_v33 = vpop.eup %1232  ;;  %v1003_v34 = vadd.f32 1e-05, %v1001_v32 }
 0xa9e   : > { %v1005_v35 = vmul.f32 %v1233_v33, %v1002_v31  ;;  %vm1011_vm12 = vweird.f32 %v1233_v33 }
 0xa9f   : > { %1234 = vrsqrt.f32 %v1003_v34  ;;  %vm1012_vm14 = vmor %vm1010_vm13, %vm1011_vm12  ;;  %vm1020_vm2 = vweird.f32 %v1003_v34 }
 0xaa0   : > { %v1006_v36 = vmul.f32 %v1233_v33, %v1005_v35  ;;  %1238 = vrcp.f32 (%p85_p0), %v1268_v15 }
 0xaa2   : > { %v1007_v37 = vmul.f32 0.5, %v1006_v36 }
 0xaa4   : > { %v1008_v38 = vsub.f32 1.5, %v1007_v37 }
 0xaa5   : > { %v1235_v39 = vpop.eup %1234 }
 0xaa6   : > { %v1009_v40 = vmul.f32 %v1233_v33, %v1008_v38  ;;  %v1015_v41 = vmul.f32 %v1235_v39, %v1003_v34  ;;  %vm1021_vm15 = vweird.f32 %v1235_v39  ;;  %v1239_v58 = vpop.eup (%p85_p0), %1238 }
 0xaa7   : > { %vm1022_vm3 = vmor %vm1020_vm2, %vm1021_vm15  ;;  %v1052_v61 = vmul.f32 (%p85_p0), 8.0, %v1239_v58  ;;  %vm1056_vm4 = vweird.f32 (%p85_p0), %v1239_v58 }
 0xaa8   : > { %v1013_v0 = vsel %vm1012_vm14, %v1233_v33, %v1009_v40  ;;  %v1016_v42 = vmul.f32 %v1235_v39, %v1015_v41 }
 0xaa9   : > { %v1024_v43 = vmul.f32 %v1013_v0, %v990_v13  ;;  %v1053_v1 = vsub.f32 (%p85_p0), 1.0, %v1052_v61 }
 0xaaa   : > { %v1017_v22 = vmul.f32 0.5, %v1016_v42 }
 0xaab   : > { %v1029_v44 = vmul.f32 %v1192_v27, %v1024_v43  ;;  %v1054_v2 = vmul.f32 (%p85_p0), %v1239_v58, %v1053_v1 }
 0xaac   : > { %v1018_v45 = vsub.f32 1.5, %v1017_v22 }
 0xaad   : > { %v1034_v46 = vadd.f32 %v1193_v28, %v1029_v44   ;;  %v1055_v4 = vadd.f32 (%p85_p0), %v1239_v58, %v1054_v2 }
 0xaae   : > { %v1019_v47 = vmul.f32 %v1235_v39, %v1018_v45 }
 0xaaf   : > { %v1715_v8 = vmov %v1034_v46  ;;  %v1037_v52 = vsel (%p85_p0), %vm144_vm0, %v1034_v46, 0.0  ;;  %v1057_v6 = vsel (%p85_p0), %vm1056_vm4, %v1239_v58, %v1055_v4 }
 0xab0   : > { %v1023_v48 = vsel %vm1022_vm3, %v1235_v39, %v1019_v47  ;;  %v1038_v54 = vrot.slane (%p85_p0), %v1037_v52, 4 }
 0xab1   : > { %v1025_v49 = vmul.f32 %v1023_v48, %v991_v21 }
 0xab2   :  { %v1039_v23 = vadd.f32 (%p85_p0), %v1038_v54, %v1037_v52 }
 0xab3   : > { %v1030_v50 = vmul.f32 %v1192_v27, %v1025_v49  ;;  %87 = sbr.rel (!%p85_p0) target bundleno = 137 (0x89), region = 111 }
 0xab4   :  { %v1040_v16 = vrot.slane (%p85_p0), %v1039_v23, 2 }
 0xab5   : > { %v1035_v51 = vadd.f32 %v1193_v28, %v1030_v50  }
 0xab6   :  { %v1041_v59 = vadd.f32 (%p85_p0), %v1040_v16, %v1039_v23 }
 0xab7   : > { %v1714_v12 = vmov %v1035_v51  ;;  %v1044_v53 = vsel (%p85_p0), %vm144_vm0, %v1035_v51, 0.0  ;;  %vm1069_vm0 = vcmask (%p85_p0), 1041409  }
 0xab8   :  { %v1045_v56 = vrot.slane %v1044_v53, 4  ;;  %v1042_v8 = vrot.slane %v1041_v59, 1 }
 0xaba   :  { %v1046_v26 = vadd.f32 %v1045_v56, %v1044_v53  ;;  %v1043_v12 = vadd.f32 %v1042_v8, %v1041_v59 }
 0xabc   :  { %v1047_v57 = vrot.slane %v1046_v26, 2  ;;  %v1058_v7 = vmul.f32 %v1057_v6, %v1043_v12 }
 0xabe   :  { %v1048_v60 = vadd.f32 %v1047_v57, %v1046_v26  ;;  %v1064_v30 = vmul.f32 %v1236_v5, %v1058_v7 }
 0xac0   :  { %v1049_v62 = vrot.slane %v1048_v60, 1 }
 0xac2   :  { %v1050_v3 = vadd.f32 %v1049_v62, %v1048_v60 }
 0xac4   :  { %v1059_v55 = vmul.f32 %v1057_v6, %v1050_v3 }
 0xac6   :  { %v1065_v9 = vmul.f32 %v1236_v5, %v1059_v55 }
 0xac8   :  { %v1068_v10 = vrot.slane %v1065_v9, 7 }
 0xaca   :  { %v1070_v11 = vsel %vm1069_vm0, %v1068_v10, %v1064_v30 }
 0xacb   :  { %v1073_v13 = vsel %vm1072_vm5, %v1070_v11, 0.0 }
 0xacc   :  { %1074 = vadd.xlane.f32.xlu0 %v1073_v13 }
 0xb3f   :  { %v1075_v17 = vpop.xlane.xlu0 %1074 }
 0xb40   :  { %v1080_v18 = vadd.f32 %v1237_v14, %v1075_v17 }
 0xb42   :  { %1082 = vst.msk [vmem:[%s1703_s18] sm:$0x3] %vm1081_vm1, %v1080_v18 }

</bundles_post_ra>
